<compile_context>
chip_gen: v7x
topology: tpu7x:2x2x1
jax: 0.10.0
libtpu: 0.0.40
codegen_flags: <defaults>
</compile_context>

<pallas_src>
import math
import functools

import jax
import jax.numpy as jnp
from jax.experimental import pallas as pl
from jax.experimental.pallas import tpu as pltpu


def make_positional_encoding(d_model, max_len=5000):
    """Same table as PositionalEncoding.__init__, returned as (max_len, d_model)."""
    position = jnp.arange(0, max_len, dtype=jnp.float32)[:, None]
    div_term = jnp.exp(
        jnp.arange(0, d_model, 2, dtype=jnp.float32) * (-math.log(10000.0) / d_model)
    )
    pe = jnp.zeros((max_len, d_model), dtype=jnp.float32)
    pe = pe.at[:, 0::2].set(jnp.sin(position * div_term))
    pe = pe.at[:, 1::2].set(jnp.cos(position * div_term))
    return pe


def _round_up(x, m):
    return ((x + m - 1) // m) * m


# Conservative table-residency budget (table is double-buffered by Pallas, and
# v5e's default scoped VMEM is only 16 MiB; v7x has 64 MiB physical per TC).
_VMEM_TABLE_BUDGET_BYTES = 4 * 1024 * 1024


def _encoder_kernel_vmem_table(ids_ref, srow_ref, table_ref, pe_ref, out_ref, *,
                               scale, rows_per_block):
    """Small-vocab fast path: embedding table + PE live fully in VMEM.

    ids_ref:   (R,)           int32 SMEM  token id per flat (s, b) row (pre-clamped)
    srow_ref:  (R,)           int32 SMEM  PE row (= s) per flat row
    table_ref: (ntoken, ninp) f32   VMEM  embedding table (resident, DMA'd once)
    pe_ref:    (S, ninp)      f32   VMEM  positional encoding (resident, DMA'd once)
    out_ref:   (TR, ninp)     f32   VMEM  output rows for this block
    """
    base = pl.program_id(0) * rows_per_block
    # Static row loop -> all output stores are at static sublane offsets; the
    # only dynamic addressing is the (read-only) table / PE row selection.
    # The per-row mul/add rides in otherwise-idle VPU slots next to the
    # load/store/scalar work, so fusing scale+PE here is essentially free.
    for j in range(rows_per_block):
        tok = ids_ref[base + j]
        s = srow_ref[base + j]
        emb = table_ref[pl.ds(tok, 1), :].astype(jnp.float32)      # (1, ninp)
        out_ref[j:j + 1, :] = emb * scale + pe_ref[pl.ds(s, 1), :]


def _encoder_kernel_hbm_gather(ids_ref, srow_ref, emb_hbm, pe_ref, out_ref,
                               buf, sems, *, scale, rows_per_block, depth):
    """Large-vocab fallback: table stays in HBM; rows are gathered with a
    `depth`-deep rolling window of per-row async copies (bounded outstanding
    DMAs, `depth` reused semaphores) so copy latency overlaps compute.

    emb_hbm: (ntoken, ninp) raw HBM ref (memory_space=pl.ANY)
    buf:     (depth, 1, ninp) VMEM scratch, one slot per in-flight row
    sems:    (depth,) DMA semaphores
    """
    base = pl.program_id(0) * rows_per_block

    def start_row(j):
        tok = ids_ref[base + j]
        pltpu.make_async_copy(emb_hbm.at[pl.ds(tok, 1), :],
                              buf.at[j % depth], sems.at[j % depth]).start()

    def wait_row(j):
        # Wait descriptor only needs matching shapes; src address is irrelevant.
        pltpu.make_async_copy(emb_hbm.at[pl.ds(0, 1), :],
                              buf.at[j % depth], sems.at[j % depth]).wait()

    # Prologue: fill the window.
    for j in range(min(depth, rows_per_block)):
        start_row(j)

    for j in range(rows_per_block):
        wait_row(j)
        s = srow_ref[base + j]
        emb = buf[j % depth].astype(jnp.float32)                   # (1, ninp)
        out_ref[j:j + 1, :] = emb * scale + pe_ref[pl.ds(s, 1), :]
        # Only reuse the slot after its row has been consumed.
        if j + depth < rows_per_block:
            start_row(j + depth)


def encoder_forward(src, emb_weight, pe_full, *, force_hbm_gather=False):
    """src: (B, S) int32; emb_weight: (ntoken, ninp); pe_full: (max_len, ninp).

    Returns (S, B, ninp) f32, matching the PyTorch Encoder.forward output.
    """
    B, S = src.shape
    ntoken, ninp = emb_weight.shape
    scale = float(math.sqrt(ninp))
    total_rows = B * S

    # (s, b)-major flat row order: the kernel output reshapes for free to
    # (S, B, ninp).  Clamp ids once here (PyTorch nn.Embedding would raise on
    # OOB ids; we clamp instead of faulting).
    ids = jnp.clip(src.T.reshape(-1).astype(jnp.int32), 0, ntoken - 1)   # (S*B,)
    srow = jnp.repeat(jnp.arange(S, dtype=jnp.int32), B)                 # (S*B,)
    pe = pe_full[:S, :].astype(jnp.float32)                              # (S, ninp)

    itemsize = jnp.dtype(emb_weight.dtype).itemsize
    table_bytes = ntoken * ninp * itemsize
    use_vmem_table = (not force_hbm_gather) and table_bytes <= _VMEM_TABLE_BUDGET_BYTES

    # Rows per grid block: multiple of 8, decoupled from S; pad the flat row
    # count up to a block multiple (padded rows use id 0 / PE row 0 and are
    # sliced off in the wrapper).  Caps keep the statically-unrolled row loop
    # at a sane size.
    max_rows = 256 if use_vmem_table else 128
    TR = _round_up(min(max_rows, total_rows), 8)
    rows_pad = _round_up(total_rows, TR)
    num_blocks = rows_pad // TR
    if rows_pad != total_rows:
        padn = rows_pad - total_rows
        ids = jnp.pad(ids, (0, padn))
        srow = jnp.pad(srow, (0, padn))
    # NOTE: 1-D SMEM arrays pad to the next power of two; monitor SMEM if B*S
    # grows into the tens of thousands.

    out_shape = jax.ShapeDtypeStruct((rows_pad, ninp), jnp.float32)
    out_spec = pl.BlockSpec((TR, ninp), lambda i, ids_r, srow_r: (i, 0))
    pe_spec = pl.BlockSpec((S, ninp), lambda i, ids_r, srow_r: (0, 0))   # resident

    flops = 2 * rows_pad * ninp
    out_bytes = rows_pad * ninp * 4
    pe_bytes = S * ninp * 4
    idx_bytes = 2 * rows_pad * 4

    if use_vmem_table:
        kernel = functools.partial(_encoder_kernel_vmem_table,
                                   scale=scale, rows_per_block=TR)
        grid_spec = pltpu.PrefetchScalarGridSpec(
            num_scalar_prefetch=2,                      # ids, srow -> SMEM
            grid=(num_blocks,),
            in_specs=[
                # Whole table resident in VMEM (constant index map -> one DMA).
                pl.BlockSpec((ntoken, ninp), lambda i, ids_r, srow_r: (0, 0)),
                pe_spec,
            ],
            out_specs=out_spec,
        )
        bytes_accessed = out_bytes + pe_bytes + idx_bytes + table_bytes
    else:
        depth = min(8, TR)
        kernel = functools.partial(_encoder_kernel_hbm_gather,
                                   scale=scale, rows_per_block=TR, depth=depth)
        grid_spec = pltpu.PrefetchScalarGridSpec(
            num_scalar_prefetch=2,
            grid=(num_blocks,),
            in_specs=[
                pl.BlockSpec(memory_space=pl.ANY),       # table stays in HBM
                pe_spec,
            ],
            out_specs=out_spec,
            scratch_shapes=[
                pltpu.VMEM((depth, 1, ninp), emb_weight.dtype),   # gather window
                pltpu.SemaphoreType.DMA((depth,)),                # reused sems
            ],
        )
        bytes_accessed = out_bytes + pe_bytes + idx_bytes + rows_pad * ninp * itemsize

    out_flat = pl.pallas_call(
        kernel,
        out_shape=out_shape,
        grid_spec=grid_spec,
        compiler_params=pltpu.CompilerParams(
            dimension_semantics=("parallel",)),
        cost_estimate=pl.CostEstimate(
            flops=flops, transcendentals=0, bytes_accessed=bytes_accessed),
    )(ids, srow, emb_weight, pe)

    if rows_pad != total_rows:
        out_flat = out_flat[:total_rows]
    # Free reshape (row-major layout unchanged): rows are already (s, b)-major.
    return out_flat.reshape(S, B, ninp)


def encoder_reference(src, emb_weight, pe_full):
    """Pure-JAX reference mirroring the PyTorch forward (eval mode)."""
    ninp = emb_weight.shape[1]
    src_t = src.T                                   # (S, B)
    x = emb_weight[src_t] * math.sqrt(ninp)         # (S, B, ninp)
    return x + pe_full[: src_t.shape[0], None, :]   # broadcast over batch


if __name__ == "__main__":
    # Small shapes consistent with the module (lane-dense hidden size).
    ntoken, ninp = 64, 128
    B, S = 2, 16

    key = jax.random.PRNGKey(0)
    k_emb, k_src = jax.random.split(key)

    # Deterministic init mirroring init_weights(): uniform(-0.1, 0.1).
    emb_weight = jax.random.uniform(
        k_emb, (ntoken, ninp), dtype=jnp.float32, minval=-0.1, maxval=0.1)
    src = jax.random.randint(k_src, (B, S), 0, ntoken, dtype=jnp.int32)

    pe_full = make_positional_encoding(ninp, max_len=5000)
    ref = encoder_reference(src, emb_weight, pe_full)

    # Fast path: VMEM-resident table (used for the demo shapes).
    out = jax.block_until_ready(encoder_forward(src, emb_weight, pe_full))
    assert out.shape == (S, B, ninp), out.shape
    assert jnp.allclose(out, ref, atol=1e-5, rtol=1e-5), "VMEM-table path mismatch"

    # Fallback path: HBM table + windowed DMA gather (exercised here for coverage).
    out_hbm = jax.block_until_ready(
        encoder_forward(src, emb_weight, pe_full, force_hbm_gather=True))
    assert jnp.allclose(out_hbm, ref, atol=1e-5, rtol=1e-5), "HBM-gather path mismatch"

    print("KERNEL_OK")
</pallas_src>

<mosaic_0001>
module attributes {stable_mosaic.version = 11 : i64} {
  func.func @_encoder_kernel_vmem_table(%arg0: i32, %arg1: memref<32xi32, #tpu.memory_space<smem>>, %arg2: memref<32xi32, #tpu.memory_space<smem>>, %arg3: memref<64x128xf32, #tpu.memory_space<vmem>>, %arg4: memref<16x128xf32, #tpu.memory_space<vmem>>, %arg5: memref<32x128xf32, #tpu.memory_space<vmem>>) attributes {dimension_semantics = [#tpu.dimension_semantics<parallel>], iteration_bounds = array<i64: 1>, scalar_prefetch = 2 : i64, scratch_operands = 0 : i64, tpu.core_type = #tpu.core_type<tc>, window_params = [{pipeline_mode = #tpu.pipeline_mode<synchronous>, transform_indices = @transform_0, window_bounds = array<i64: 64, 128>}, {pipeline_mode = #tpu.pipeline_mode<synchronous>, transform_indices = @transform_1, window_bounds = array<i64: 16, 128>}, {transform_indices = @transform_2, window_bounds = array<i64: 32, 128>}]} {
    %c32_i32 = arith.constant 32 : i32
    %0 = arith.muli %arg0, %c32_i32 : i32
    %c0_i32 = arith.constant 0 : i32
    %1 = arith.addi %0, %c0_i32 : i32
    %2 = arith.index_cast %1 : i32 to index
    %3 = memref.load %arg1[%2] : memref<32xi32, #tpu.memory_space<smem>>
    %c0_i32_0 = arith.constant 0 : i32
    %4 = arith.addi %0, %c0_i32_0 : i32
    %5 = arith.index_cast %4 : i32 to index
    %6 = memref.load %arg2[%5] : memref<32xi32, #tpu.memory_space<smem>>
    %7 = arith.index_cast %3 : i32 to index
    %c0 = arith.constant 0 : index
    %8 = vector.load %arg3[%7, %c0] : memref<64x128xf32, #tpu.memory_space<vmem>>, vector<1x128xf32>
    %cst = arith.constant 11.3137083 : f32
    %9 = vector.broadcast %cst : f32 to vector<1x128xf32>
    %10 = arith.mulf %8, %9 : vector<1x128xf32>
    %11 = arith.index_cast %6 : i32 to index
    %c0_1 = arith.constant 0 : index
    %12 = vector.load %arg4[%11, %c0_1] : memref<16x128xf32, #tpu.memory_space<vmem>>, vector<1x128xf32>
    %13 = arith.addf %10, %12 : vector<1x128xf32>
    %c0_2 = arith.constant 0 : index
    %c0_3 = arith.constant 0 : index
    %14 = vector.load %arg5[%c0_2, %c0_3] : memref<32x128xf32, #tpu.memory_space<vmem>>, vector<1x128xf32>
    tpu.vector_store %arg5[%c0_2, %c0_3], %13 {strides = array<i32>} : memref<32x128xf32, #tpu.memory_space<vmem>>, vector<1x128xf32>,
    %c1_i32 = arith.constant 1 : i32
    %15 = arith.addi %0, %c1_i32 : i32
    %16 = arith.index_cast %15 : i32 to index
    %17 = memref.load %arg1[%16] : memref<32xi32, #tpu.memory_space<smem>>
    %c1_i32_4 = arith.constant 1 : i32
    %18 = arith.addi %0, %c1_i32_4 : i32
    %19 = arith.index_cast %18 : i32 to index
    %20 = memref.load %arg2[%19] : memref<32xi32, #tpu.memory_space<smem>>
    %21 = arith.index_cast %17 : i32 to index
    %c0_5 = arith.constant 0 : index
    %22 = vector.load %arg3[%21, %c0_5] : memref<64x128xf32, #tpu.memory_space<vmem>>, vector<1x128xf32>
    %cst_6 = arith.constant 11.3137083 : f32
    %23 = vector.broadcast %cst_6 : f32 to vector<1x128xf32>
    %24 = arith.mulf %22, %23 : vector<1x128xf32>
    %25 = arith.index_cast %20 : i32 to index
    %c0_7 = arith.constant 0 : index
    %26 = vector.load %arg4[%25, %c0_7] : memref<16x128xf32, #tpu.memory_space<vmem>>, vector<1x128xf32>
    %27 = arith.addf %24, %26 : vector<1x128xf32>
    %c1 = arith.constant 1 : index
    %c0_8 = arith.constant 0 : index
    %28 = vector.load %arg5[%c1, %c0_8] : memref<32x128xf32, #tpu.memory_space<vmem>>, vector<1x128xf32>
    tpu.vector_store %arg5[%c1, %c0_8], %27 {strides = array<i32>} : memref<32x128xf32, #tpu.memory_space<vmem>>, vector<1x128xf32>,
    %c2_i32 = arith.constant 2 : i32
    %29 = arith.addi %0, %c2_i32 : i32
    %30 = arith.index_cast %29 : i32 to index
    %31 = memref.load %arg1[%30] : memref<32xi32, #tpu.memory_space<smem>>
    %c2_i32_9 = arith.constant 2 : i32
    %32 = arith.addi %0, %c2_i32_9 : i32
    %33 = arith.index_cast %32 : i32 to index
    %34 = memref.load %arg2[%33] : memref<32xi32, #tpu.memory_space<smem>>
    %35 = arith.index_cast %31 : i32 to index
    %c0_10 = arith.constant 0 : index
    %36 = vector.load %arg3[%35, %c0_10] : memref<64x128xf32, #tpu.memory_space<vmem>>, vector<1x128xf32>
    %cst_11 = arith.constant 11.3137083 : f32
    %37 = vector.broadcast %cst_11 : f32 to vector<1x128xf32>
    %38 = arith.mulf %36, %37 : vector<1x128xf32>
    %39 = arith.index_cast %34 : i32 to index
    %c0_12 = arith.constant 0 : index
    %40 = vector.load %arg4[%39, %c0_12] : memref<16x128xf32, #tpu.memory_space<vmem>>, vector<1x128xf32>
    %41 = arith.addf %38, %40 : vector<1x128xf32>
    %c2 = arith.constant 2 : index
    %c0_13 = arith.constant 0 : index
    %42 = vector.load %arg5[%c2, %c0_13] : memref<32x128xf32, #tpu.memory_space<vmem>>, vector<1x128xf32>
    tpu.vector_store %arg5[%c2, %c0_13], %41 {strides = array<i32>} : memref<32x128xf32, #tpu.memory_space<vmem>>, vector<1x128xf32>,
    %c3_i32 = arith.constant 3 : i32
    %43 = arith.addi %0, %c3_i32 : i32
    %44 = arith.index_cast %43 : i32 to index
    %45 = memref.load %arg1[%44] : memref<32xi32, #tpu.memory_space<smem>>
    %c3_i32_14 = arith.constant 3 : i32
    %46 = arith.addi %0, %c3_i32_14 : i32
    %47 = arith.index_cast %46 : i32 to index
    %48 = memref.load %arg2[%47] : memref<32xi32, #tpu.memory_space<smem>>
    %49 = arith.index_cast %45 : i32 to index
    %c0_15 = arith.constant 0 : index
    %50 = vector.load %arg3[%49, %c0_15] : memref<64x128xf32, #tpu.memory_space<vmem>>, vector<1x128xf32>
    %cst_16 = arith.constant 11.3137083 : f32
    %51 = vector.broadcast %cst_16 : f32 to vector<1x128xf32>
    %52 = arith.mulf %50, %51 : vector<1x128xf32>
    %53 = arith.index_cast %48 : i32 to index
    %c0_17 = arith.constant 0 : index
    %54 = vector.load %arg4[%53, %c0_17] : memref<16x128xf32, #tpu.memory_space<vmem>>, vector<1x128xf32>
    %55 = arith.addf %52, %54 : vector<1x128xf32>
    %c3 = arith.constant 3 : index
    %c0_18 = arith.constant 0 : index
    %56 = vector.load %arg5[%c3, %c0_18] : memref<32x128xf32, #tpu.memory_space<vmem>>, vector<1x128xf32>
    tpu.vector_store %arg5[%c3, %c0_18], %55 {strides = array<i32>} : memref<32x128xf32, #tpu.memory_space<vmem>>, vector<1x128xf32>,
    %c4_i32 = arith.constant 4 : i32
    %57 = arith.addi %0, %c4_i32 : i32
    %58 = arith.index_cast %57 : i32 to index
    %59 = memref.load %arg1[%58] : memref<32xi32, #tpu.memory_space<smem>>
    %c4_i32_19 = arith.constant 4 : i32
    %60 = arith.addi %0, %c4_i32_19 : i32
    %61 = arith.index_cast %60 : i32 to index
    %62 = memref.load %arg2[%61] : memref<32xi32, #tpu.memory_space<smem>>
    %63 = arith.index_cast %59 : i32 to index
    %c0_20 = arith.constant 0 : index
    %64 = vector.load %arg3[%63, %c0_20] : memref<64x128xf32, #tpu.memory_space<vmem>>, vector<1x128xf32>
    %cst_21 = arith.constant 11.3137083 : f32
    %65 = vector.broadcast %cst_21 : f32 to vector<1x128xf32>
    %66 = arith.mulf %64, %65 : vector<1x128xf32>
    %67 = arith.index_cast %62 : i32 to index
    %c0_22 = arith.constant 0 : index
    %68 = vector.load %arg4[%67, %c0_22] : memref<16x128xf32, #tpu.memory_space<vmem>>, vector<1x128xf32>
    %69 = arith.addf %66, %68 : vector<1x128xf32>
    %c4 = arith.constant 4 : index
    %c0_23 = arith.constant 0 : index
    %70 = vector.load %arg5[%c4, %c0_23] : memref<32x128xf32, #tpu.memory_space<vmem>>, vector<1x128xf32>
    tpu.vector_store %arg5[%c4, %c0_23], %69 {strides = array<i32>} : memref<32x128xf32, #tpu.memory_space<vmem>>, vector<1x128xf32>,
    %c5_i32 = arith.constant 5 : i32
    %71 = arith.addi %0, %c5_i32 : i32
    %72 = arith.index_cast %71 : i32 to index
    %73 = memref.load %arg1[%72] : memref<32xi32, #tpu.memory_space<smem>>
    %c5_i32_24 = arith.constant 5 : i32
    %74 = arith.addi %0, %c5_i32_24 : i32
    %75 = arith.index_cast %74 : i32 to index
    %76 = memref.load %arg2[%75] : memref<32xi32, #tpu.memory_space<smem>>
    %77 = arith.index_cast %73 : i32 to index
    %c0_25 = arith.constant 0 : index
    %78 = vector.load %arg3[%77, %c0_25] : memref<64x128xf32, #tpu.memory_space<vmem>>, vector<1x128xf32>
    %cst_26 = arith.constant 11.3137083 : f32
    %79 = vector.broadcast %cst_26 : f32 to vector<1x128xf32>
    %80 = arith.mulf %78, %79 : vector<1x128xf32>
    %81 = arith.index_cast %76 : i32 to index
    %c0_27 = arith.constant 0 : index
    %82 = vector.load %arg4[%81, %c0_27] : memref<16x128xf32, #tpu.memory_space<vmem>>, vector<1x128xf32>
    %83 = arith.addf %80, %82 : vector<1x128xf32>
    %c5 = arith.constant 5 : index
    %c0_28 = arith.constant 0 : index
    %84 = vector.load %arg5[%c5, %c0_28] : memref<32x128xf32, #tpu.memory_space<vmem>>, vector<1x128xf32>
    tpu.vector_store %arg5[%c5, %c0_28], %83 {strides = array<i32>} : memref<32x128xf32, #tpu.memory_space<vmem>>, vector<1x128xf32>,
    %c6_i32 = arith.constant 6 : i32
    %85 = arith.addi %0, %c6_i32 : i32
    %86 = arith.index_cast %85 : i32 to index
    %87 = memref.load %arg1[%86] : memref<32xi32, #tpu.memory_space<smem>>
    %c6_i32_29 = arith.constant 6 : i32
    %88 = arith.addi %0, %c6_i32_29 : i32
    %89 = arith.index_cast %88 : i32 to index
    %90 = memref.load %arg2[%89] : memref<32xi32, #tpu.memory_space<smem>>
    %91 = arith.index_cast %87 : i32 to index
    %c0_30 = arith.constant 0 : index
    %92 = vector.load %arg3[%91, %c0_30] : memref<64x128xf32, #tpu.memory_space<vmem>>, vector<1x128xf32>
    %cst_31 = arith.constant 11.3137083 : f32
    %93 = vector.broadcast %cst_31 : f32 to vector<1x128xf32>
    %94 = arith.mulf %92, %93 : vector<1x128xf32>
    %95 = arith.index_cast %90 : i32 to index
    %c0_32 = arith.constant 0 : index
    %96 = vector.load %arg4[%95, %c0_32] : memref<16x128xf32, #tpu.memory_space<vmem>>, vector<1x128xf32>
    %97 = arith.addf %94, %96 : vector<1x128xf32>
    %c6 = arith.constant 6 : index
    %c0_33 = arith.constant 0 : index
    %98 = vector.load %arg5[%c6, %c0_33] : memref<32x128xf32, #tpu.memory_space<vmem>>, vector<1x128xf32>
    tpu.vector_store %arg5[%c6, %c0_33], %97 {strides = array<i32>} : memref<32x128xf32, #tpu.memory_space<vmem>>, vector<1x128xf32>,
    %c7_i32 = arith.constant 7 : i32
    %99 = arith.addi %0, %c7_i32 : i32
    %100 = arith.index_cast %99 : i32 to index
    %101 = memref.load %arg1[%100] : memref<32xi32, #tpu.memory_space<smem>>
    %c7_i32_34 = arith.constant 7 : i32
    %102 = arith.addi %0, %c7_i32_34 : i32
    %103 = arith.index_cast %102 : i32 to index
    %104 = memref.load %arg2[%103] : memref<32xi32, #tpu.memory_space<smem>>
    %105 = arith.index_cast %101 : i32 to index
    %c0_35 = arith.constant 0 : index
    %106 = vector.load %arg3[%105, %c0_35] : memref<64x128xf32, #tpu.memory_space<vmem>>, vector<1x128xf32>
    %cst_36 = arith.constant 11.3137083 : f32
    %107 = vector.broadcast %cst_36 : f32 to vector<1x128xf32>
    %108 = arith.mulf %106, %107 : vector<1x128xf32>
    %109 = arith.index_cast %104 : i32 to index
    %c0_37 = arith.constant 0 : index
    %110 = vector.load %arg4[%109, %c0_37] : memref<16x128xf32, #tpu.memory_space<vmem>>, vector<1x128xf32>
    %111 = arith.addf %108, %110 : vector<1x128xf32>
    %c7 = arith.constant 7 : index
    %c0_38 = arith.constant 0 : index
    %112 = vector.load %arg5[%c7, %c0_38] : memref<32x128xf32, #tpu.memory_space<vmem>>, vector<1x128xf32>
    tpu.vector_store %arg5[%c7, %c0_38], %111 {strides = array<i32>} : memref<32x128xf32, #tpu.memory_space<vmem>>, vector<1x128xf32>,
    %c8_i32 = arith.constant 8 : i32
    %113 = arith.addi %0, %c8_i32 : i32
    %114 = arith.index_cast %113 : i32 to index
    %115 = memref.load %arg1[%114] : memref<32xi32, #tpu.memory_space<smem>>
    %c8_i32_39 = arith.constant 8 : i32
    %116 = arith.addi %0, %c8_i32_39 : i32
    %117 = arith.index_cast %116 : i32 to index
    %118 = memref.load %arg2[%117] : memref<32xi32, #tpu.memory_space<smem>>
    %119 = arith.index_cast %115 : i32 to index
    %c0_40 = arith.constant 0 : index
    %120 = vector.load %arg3[%119, %c0_40] : memref<64x128xf32, #tpu.memory_space<vmem>>, vector<1x128xf32>
    %cst_41 = arith.constant 11.3137083 : f32
    %121 = vector.broadcast %cst_41 : f32 to vector<1x128xf32>
    %122 = arith.mulf %120, %121 : vector<1x128xf32>
    %123 = arith.index_cast %118 : i32 to index
    %c0_42 = arith.constant 0 : index
    %124 = vector.load %arg4[%123, %c0_42] : memref<16x128xf32, #tpu.memory_space<vmem>>, vector<1x128xf32>
    %125 = arith.addf %122, %124 : vector<1x128xf32>
    %c8 = arith.constant 8 : index
    %c0_43 = arith.constant 0 : index
    %126 = vector.load %arg5[%c8, %c0_43] : memref<32x128xf32, #tpu.memory_space<vmem>>, vector<1x128xf32>
    tpu.vector_store %arg5[%c8, %c0_43], %125 {strides = array<i32>} : memref<32x128xf32, #tpu.memory_space<vmem>>, vector<1x128xf32>,
    %c9_i32 = arith.constant 9 : i32
    %127 = arith.addi %0, %c9_i32 : i32
    %128 = arith.index_cast %127 : i32 to index
    %129 = memref.load %arg1[%128] : memref<32xi32, #tpu.memory_space<smem>>
    %c9_i32_44 = arith.constant 9 : i32
    %130 = arith.addi %0, %c9_i32_44 : i32
    %131 = arith.index_cast %130 : i32 to index
    %132 = memref.load %arg2[%131] : memref<32xi32, #tpu.memory_space<smem>>
    %133 = arith.index_cast %129 : i32 to index
    %c0_45 = arith.constant 0 : index
    %134 = vector.load %arg3[%133, %c0_45] : memref<64x128xf32, #tpu.memory_space<vmem>>, vector<1x128xf32>
    %cst_46 = arith.constant 11.3137083 : f32
    %135 = vector.broadcast %cst_46 : f32 to vector<1x128xf32>
    %136 = arith.mulf %134, %135 : vector<1x128xf32>
    %137 = arith.index_cast %132 : i32 to index
    %c0_47 = arith.constant 0 : index
    %138 = vector.load %arg4[%137, %c0_47] : memref<16x128xf32, #tpu.memory_space<vmem>>, vector<1x128xf32>
    %139 = arith.addf %136, %138 : vector<1x128xf32>
    %c9 = arith.constant 9 : index
    %c0_48 = arith.constant 0 : index
    %140 = vector.load %arg5[%c9, %c0_48] : memref<32x128xf32, #tpu.memory_space<vmem>>, vector<1x128xf32>
    tpu.vector_store %arg5[%c9, %c0_48], %139 {strides = array<i32>} : memref<32x128xf32, #tpu.memory_space<vmem>>, vector<1x128xf32>,
    %c10_i32 = arith.constant 10 : i32
    %141 = arith.addi %0, %c10_i32 : i32
    %142 = arith.index_cast %141 : i32 to index
    %143 = memref.load %arg1[%142] : memref<32xi32, #tpu.memory_space<smem>>
    %c10_i32_49 = arith.constant 10 : i32
    %144 = arith.addi %0, %c10_i32_49 : i32
    %145 = arith.index_cast %144 : i32 to index
    %146 = memref.load %arg2[%145] : memref<32xi32, #tpu.memory_space<smem>>
    %147 = arith.index_cast %143 : i32 to index
    %c0_50 = arith.constant 0 : index
    %148 = vector.load %arg3[%147, %c0_50] : memref<64x128xf32, #tpu.memory_space<vmem>>, vector<1x128xf32>
    %cst_51 = arith.constant 11.3137083 : f32
    %149 = vector.broadcast %cst_51 : f32 to vector<1x128xf32>
    %150 = arith.mulf %148, %149 : vector<1x128xf32>
    %151 = arith.index_cast %146 : i32 to index
    %c0_52 = arith.constant 0 : index
    %152 = vector.load %arg4[%151, %c0_52] : memref<16x128xf32, #tpu.memory_space<vmem>>, vector<1x128xf32>
    %153 = arith.addf %150, %152 : vector<1x128xf32>
    %c10 = arith.constant 10 : index
    %c0_53 = arith.constant 0 : index
    %154 = vector.load %arg5[%c10, %c0_53] : memref<32x128xf32, #tpu.memory_space<vmem>>, vector<1x128xf32>
    tpu.vector_store %arg5[%c10, %c0_53], %153 {strides = array<i32>} : memref<32x128xf32, #tpu.memory_space<vmem>>, vector<1x128xf32>,
    %c11_i32 = arith.constant 11 : i32
    %155 = arith.addi %0, %c11_i32 : i32
    %156 = arith.index_cast %155 : i32 to index
    %157 = memref.load %arg1[%156] : memref<32xi32, #tpu.memory_space<smem>>
    %c11_i32_54 = arith.constant 11 : i32
    %158 = arith.addi %0, %c11_i32_54 : i32
    %159 = arith.index_cast %158 : i32 to index
    %160 = memref.load %arg2[%159] : memref<32xi32, #tpu.memory_space<smem>>
    %161 = arith.index_cast %157 : i32 to index
    %c0_55 = arith.constant 0 : index
    %162 = vector.load %arg3[%161, %c0_55] : memref<64x128xf32, #tpu.memory_space<vmem>>, vector<1x128xf32>
    %cst_56 = arith.constant 11.3137083 : f32
    %163 = vector.broadcast %cst_56 : f32 to vector<1x128xf32>
    %164 = arith.mulf %162, %163 : vector<1x128xf32>
    %165 = arith.index_cast %160 : i32 to index
    %c0_57 = arith.constant 0 : index
    %166 = vector.load %arg4[%165, %c0_57] : memref<16x128xf32, #tpu.memory_space<vmem>>, vector<1x128xf32>
    %167 = arith.addf %164, %166 : vector<1x128xf32>
    %c11 = arith.constant 11 : index
    %c0_58 = arith.constant 0 : index
    %168 = vector.load %arg5[%c11, %c0_58] : memref<32x128xf32, #tpu.memory_space<vmem>>, vector<1x128xf32>
    tpu.vector_store %arg5[%c11, %c0_58], %167 {strides = array<i32>} : memref<32x128xf32, #tpu.memory_space<vmem>>, vector<1x128xf32>,
    %c12_i32 = arith.constant 12 : i32
    %169 = arith.addi %0, %c12_i32 : i32
    %170 = arith.index_cast %169 : i32 to index
    %171 = memref.load %arg1[%170] : memref<32xi32, #tpu.memory_space<smem>>
    %c12_i32_59 = arith.constant 12 : i32
    %172 = arith.addi %0, %c12_i32_59 : i32
    %173 = arith.index_cast %172 : i32 to index
    %174 = memref.load %arg2[%173] : memref<32xi32, #tpu.memory_space<smem>>
    %175 = arith.index_cast %171 : i32 to index
    %c0_60 = arith.constant 0 : index
    %176 = vector.load %arg3[%175, %c0_60] : memref<64x128xf32, #tpu.memory_space<vmem>>, vector<1x128xf32>
    %cst_61 = arith.constant 11.3137083 : f32
    %177 = vector.broadcast %cst_61 : f32 to vector<1x128xf32>
    %178 = arith.mulf %176, %177 : vector<1x128xf32>
    %179 = arith.index_cast %174 : i32 to index
    %c0_62 = arith.constant 0 : index
    %180 = vector.load %arg4[%179, %c0_62] : memref<16x128xf32, #tpu.memory_space<vmem>>, vector<1x128xf32>
    %181 = arith.addf %178, %180 : vector<1x128xf32>
    %c12 = arith.constant 12 : index
    %c0_63 = arith.constant 0 : index
    %182 = vector.load %arg5[%c12, %c0_63] : memref<32x128xf32, #tpu.memory_space<vmem>>, vector<1x128xf32>
    tpu.vector_store %arg5[%c12, %c0_63], %181 {strides = array<i32>} : memref<32x128xf32, #tpu.memory_space<vmem>>, vector<1x128xf32>,
    %c13_i32 = arith.constant 13 : i32
    %183 = arith.addi %0, %c13_i32 : i32
    %184 = arith.index_cast %183 : i32 to index
    %185 = memref.load %arg1[%184] : memref<32xi32, #tpu.memory_space<smem>>
    %c13_i32_64 = arith.constant 13 : i32
    %186 = arith.addi %0, %c13_i32_64 : i32
    %187 = arith.index_cast %186 : i32 to index
    %188 = memref.load %arg2[%187] : memref<32xi32, #tpu.memory_space<smem>>
    %189 = arith.index_cast %185 : i32 to index
    %c0_65 = arith.constant 0 : index
    %190 = vector.load %arg3[%189, %c0_65] : memref<64x128xf32, #tpu.memory_space<vmem>>, vector<1x128xf32>
    %cst_66 = arith.constant 11.3137083 : f32
    %191 = vector.broadcast %cst_66 : f32 to vector<1x128xf32>
    %192 = arith.mulf %190, %191 : vector<1x128xf32>
    %193 = arith.index_cast %188 : i32 to index
    %c0_67 = arith.constant 0 : index
    %194 = vector.load %arg4[%193, %c0_67] : memref<16x128xf32, #tpu.memory_space<vmem>>, vector<1x128xf32>
    %195 = arith.addf %192, %194 : vector<1x128xf32>
    %c13 = arith.constant 13 : index
    %c0_68 = arith.constant 0 : index
    %196 = vector.load %arg5[%c13, %c0_68] : memref<32x128xf32, #tpu.memory_space<vmem>>, vector<1x128xf32>
    tpu.vector_store %arg5[%c13, %c0_68], %195 {strides = array<i32>} : memref<32x128xf32, #tpu.memory_space<vmem>>, vector<1x128xf32>,
    %c14_i32 = arith.constant 14 : i32
    %197 = arith.addi %0, %c14_i32 : i32
    %198 = arith.index_cast %197 : i32 to index
    %199 = memref.load %arg1[%198] : memref<32xi32, #tpu.memory_space<smem>>
    %c14_i32_69 = arith.constant 14 : i32
    %200 = arith.addi %0, %c14_i32_69 : i32
    %201 = arith.index_cast %200 : i32 to index
    %202 = memref.load %arg2[%201] : memref<32xi32, #tpu.memory_space<smem>>
    %203 = arith.index_cast %199 : i32 to index
    %c0_70 = arith.constant 0 : index
    %204 = vector.load %arg3[%203, %c0_70] : memref<64x128xf32, #tpu.memory_space<vmem>>, vector<1x128xf32>
    %cst_71 = arith.constant 11.3137083 : f32
    %205 = vector.broadcast %cst_71 : f32 to vector<1x128xf32>
    %206 = arith.mulf %204, %205 : vector<1x128xf32>
    %207 = arith.index_cast %202 : i32 to index
    %c0_72 = arith.constant 0 : index
    %208 = vector.load %arg4[%207, %c0_72] : memref<16x128xf32, #tpu.memory_space<vmem>>, vector<1x128xf32>
    %209 = arith.addf %206, %208 : vector<1x128xf32>
    %c14 = arith.constant 14 : index
    %c0_73 = arith.constant 0 : index
    %210 = vector.load %arg5[%c14, %c0_73] : memref<32x128xf32, #tpu.memory_space<vmem>>, vector<1x128xf32>
    tpu.vector_store %arg5[%c14, %c0_73], %209 {strides = array<i32>} : memref<32x128xf32, #tpu.memory_space<vmem>>, vector<1x128xf32>,
    %c15_i32 = arith.constant 15 : i32
    %211 = arith.addi %0, %c15_i32 : i32
    %212 = arith.index_cast %211 : i32 to index
    %213 = memref.load %arg1[%212] : memref<32xi32, #tpu.memory_space<smem>>
    %c15_i32_74 = arith.constant 15 : i32
    %214 = arith.addi %0, %c15_i32_74 : i32
    %215 = arith.index_cast %214 : i32 to index
    %216 = memref.load %arg2[%215] : memref<32xi32, #tpu.memory_space<smem>>
    %217 = arith.index_cast %213 : i32 to index
    %c0_75 = arith.constant 0 : index
    %218 = vector.load %arg3[%217, %c0_75] : memref<64x128xf32, #tpu.memory_space<vmem>>, vector<1x128xf32>
    %cst_76 = arith.constant 11.3137083 : f32
    %219 = vector.broadcast %cst_76 : f32 to vector<1x128xf32>
    %220 = arith.mulf %218, %219 : vector<1x128xf32>
    %221 = arith.index_cast %216 : i32 to index
    %c0_77 = arith.constant 0 : index
    %222 = vector.load %arg4[%221, %c0_77] : memref<16x128xf32, #tpu.memory_space<vmem>>, vector<1x128xf32>
    %223 = arith.addf %220, %222 : vector<1x128xf32>
    %c15 = arith.constant 15 : index
    %c0_78 = arith.constant 0 : index
    %224 = vector.load %arg5[%c15, %c0_78] : memref<32x128xf32, #tpu.memory_space<vmem>>, vector<1x128xf32>
    tpu.vector_store %arg5[%c15, %c0_78], %223 {strides = array<i32>} : memref<32x128xf32, #tpu.memory_space<vmem>>, vector<1x128xf32>,
    %c16_i32 = arith.constant 16 : i32
    %225 = arith.addi %0, %c16_i32 : i32
    %226 = arith.index_cast %225 : i32 to index
    %227 = memref.load %arg1[%226] : memref<32xi32, #tpu.memory_space<smem>>
    %c16_i32_79 = arith.constant 16 : i32
    %228 = arith.addi %0, %c16_i32_79 : i32
    %229 = arith.index_cast %228 : i32 to index
    %230 = memref.load %arg2[%229] : memref<32xi32, #tpu.memory_space<smem>>
    %231 = arith.index_cast %227 : i32 to index
    %c0_80 = arith.constant 0 : index
    %232 = vector.load %arg3[%231, %c0_80] : memref<64x128xf32, #tpu.memory_space<vmem>>, vector<1x128xf32>
    %cst_81 = arith.constant 11.3137083 : f32
    %233 = vector.broadcast %cst_81 : f32 to vector<1x128xf32>
    %234 = arith.mulf %232, %233 : vector<1x128xf32>
    %235 = arith.index_cast %230 : i32 to index
    %c0_82 = arith.constant 0 : index
    %236 = vector.load %arg4[%235, %c0_82] : memref<16x128xf32, #tpu.memory_space<vmem>>, vector<1x128xf32>
    %237 = arith.addf %234, %236 : vector<1x128xf32>
    %c16 = arith.constant 16 : index
    %c0_83 = arith.constant 0 : index
    %238 = vector.load %arg5[%c16, %c0_83] : memref<32x128xf32, #tpu.memory_space<vmem>>, vector<1x128xf32>
    tpu.vector_store %arg5[%c16, %c0_83], %237 {strides = array<i32>} : memref<32x128xf32, #tpu.memory_space<vmem>>, vector<1x128xf32>,
    %c17_i32 = arith.constant 17 : i32
    %239 = arith.addi %0, %c17_i32 : i32
    %240 = arith.index_cast %239 : i32 to index
    %241 = memref.load %arg1[%240] : memref<32xi32, #tpu.memory_space<smem>>
    %c17_i32_84 = arith.constant 17 : i32
    %242 = arith.addi %0, %c17_i32_84 : i32
    %243 = arith.index_cast %242 : i32 to index
    %244 = memref.load %arg2[%243] : memref<32xi32, #tpu.memory_space<smem>>
    %245 = arith.index_cast %241 : i32 to index
    %c0_85 = arith.constant 0 : index
    %246 = vector.load %arg3[%245, %c0_85] : memref<64x128xf32, #tpu.memory_space<vmem>>, vector<1x128xf32>
    %cst_86 = arith.constant 11.3137083 : f32
    %247 = vector.broadcast %cst_86 : f32 to vector<1x128xf32>
    %248 = arith.mulf %246, %247 : vector<1x128xf32>
    %249 = arith.index_cast %244 : i32 to index
    %c0_87 = arith.constant 0 : index
    %250 = vector.load %arg4[%249, %c0_87] : memref<16x128xf32, #tpu.memory_space<vmem>>, vector<1x128xf32>
    %251 = arith.addf %248, %250 : vector<1x128xf32>
    %c17 = arith.constant 17 : index
    %c0_88 = arith.constant 0 : index
    %252 = vector.load %arg5[%c17, %c0_88] : memref<32x128xf32, #tpu.memory_space<vmem>>, vector<1x128xf32>
    tpu.vector_store %arg5[%c17, %c0_88], %251 {strides = array<i32>} : memref<32x128xf32, #tpu.memory_space<vmem>>, vector<1x128xf32>,
    %c18_i32 = arith.constant 18 : i32
    %253 = arith.addi %0, %c18_i32 : i32
    %254 = arith.index_cast %253 : i32 to index
    %255 = memref.load %arg1[%254] : memref<32xi32, #tpu.memory_space<smem>>
    %c18_i32_89 = arith.constant 18 : i32
    %256 = arith.addi %0, %c18_i32_89 : i32
    %257 = arith.index_cast %256 : i32 to index
    %258 = memref.load %arg2[%257] : memref<32xi32, #tpu.memory_space<smem>>
    %259 = arith.index_cast %255 : i32 to index
    %c0_90 = arith.constant 0 : index
    %260 = vector.load %arg3[%259, %c0_90] : memref<64x128xf32, #tpu.memory_space<vmem>>, vector<1x128xf32>
    %cst_91 = arith.constant 11.3137083 : f32
    %261 = vector.broadcast %cst_91 : f32 to vector<1x128xf32>
    %262 = arith.mulf %260, %261 : vector<1x128xf32>
    %263 = arith.index_cast %258 : i32 to index
    %c0_92 = arith.constant 0 : index
    %264 = vector.load %arg4[%263, %c0_92] : memref<16x128xf32, #tpu.memory_space<vmem>>, vector<1x128xf32>
    %265 = arith.addf %262, %264 : vector<1x128xf32>
    %c18 = arith.constant 18 : index
    %c0_93 = arith.constant 0 : index
    %266 = vector.load %arg5[%c18, %c0_93] : memref<32x128xf32, #tpu.memory_space<vmem>>, vector<1x128xf32>
    tpu.vector_store %arg5[%c18, %c0_93], %265 {strides = array<i32>} : memref<32x128xf32, #tpu.memory_space<vmem>>, vector<1x128xf32>,
    %c19_i32 = arith.constant 19 : i32
    %267 = arith.addi %0, %c19_i32 : i32
    %268 = arith.index_cast %267 : i32 to index
    %269 = memref.load %arg1[%268] : memref<32xi32, #tpu.memory_space<smem>>
    %c19_i32_94 = arith.constant 19 : i32
    %270 = arith.addi %0, %c19_i32_94 : i32
    %271 = arith.index_cast %270 : i32 to index
    %272 = memref.load %arg2[%271] : memref<32xi32, #tpu.memory_space<smem>>
    %273 = arith.index_cast %269 : i32 to index
    %c0_95 = arith.constant 0 : index
    %274 = vector.load %arg3[%273, %c0_95] : memref<64x128xf32, #tpu.memory_space<vmem>>, vector<1x128xf32>
    %cst_96 = arith.constant 11.3137083 : f32
    %275 = vector.broadcast %cst_96 : f32 to vector<1x128xf32>
    %276 = arith.mulf %274, %275 : vector<1x128xf32>
    %277 = arith.index_cast %272 : i32 to index
    %c0_97 = arith.constant 0 : index
    %278 = vector.load %arg4[%277, %c0_97] : memref<16x128xf32, #tpu.memory_space<vmem>>, vector<1x128xf32>
    %279 = arith.addf %276, %278 : vector<1x128xf32>
    %c19 = arith.constant 19 : index
    %c0_98 = arith.constant 0 : index
    %280 = vector.load %arg5[%c19, %c0_98] : memref<32x128xf32, #tpu.memory_space<vmem>>, vector<1x128xf32>
    tpu.vector_store %arg5[%c19, %c0_98], %279 {strides = array<i32>} : memref<32x128xf32, #tpu.memory_space<vmem>>, vector<1x128xf32>,
    %c20_i32 = arith.constant 20 : i32
    %281 = arith.addi %0, %c20_i32 : i32
    %282 = arith.index_cast %281 : i32 to index
    %283 = memref.load %arg1[%282] : memref<32xi32, #tpu.memory_space<smem>>
    %c20_i32_99 = arith.constant 20 : i32
    %284 = arith.addi %0, %c20_i32_99 : i32
    %285 = arith.index_cast %284 : i32 to index
    %286 = memref.load %arg2[%285] : memref<32xi32, #tpu.memory_space<smem>>
    %287 = arith.index_cast %283 : i32 to index
    %c0_100 = arith.constant 0 : index
    %288 = vector.load %arg3[%287, %c0_100] : memref<64x128xf32, #tpu.memory_space<vmem>>, vector<1x128xf32>
    %cst_101 = arith.constant 11.3137083 : f32
    %289 = vector.broadcast %cst_101 : f32 to vector<1x128xf32>
    %290 = arith.mulf %288, %289 : vector<1x128xf32>
    %291 = arith.index_cast %286 : i32 to index
    %c0_102 = arith.constant 0 : index
    %292 = vector.load %arg4[%291, %c0_102] : memref<16x128xf32, #tpu.memory_space<vmem>>, vector<1x128xf32>
    %293 = arith.addf %290, %292 : vector<1x128xf32>
    %c20 = arith.constant 20 : index
    %c0_103 = arith.constant 0 : index
    %294 = vector.load %arg5[%c20, %c0_103] : memref<32x128xf32, #tpu.memory_space<vmem>>, vector<1x128xf32>
    tpu.vector_store %arg5[%c20, %c0_103], %293 {strides = array<i32>} : memref<32x128xf32, #tpu.memory_space<vmem>>, vector<1x128xf32>,
    %c21_i32 = arith.constant 21 : i32
    %295 = arith.addi %0, %c21_i32 : i32
    %296 = arith.index_cast %295 : i32 to index
    %297 = memref.load %arg1[%296] : memref<32xi32, #tpu.memory_space<smem>>
    %c21_i32_104 = arith.constant 21 : i32
    %298 = arith.addi %0, %c21_i32_104 : i32
    %299 = arith.index_cast %298 : i32 to index
    %300 = memref.load %arg2[%299] : memref<32xi32, #tpu.memory_space<smem>>
    %301 = arith.index_cast %297 : i32 to index
    %c0_105 = arith.constant 0 : index
    %302 = vector.load %arg3[%301, %c0_105] : memref<64x128xf32, #tpu.memory_space<vmem>>, vector<1x128xf32>
    %cst_106 = arith.constant 11.3137083 : f32
    %303 = vector.broadcast %cst_106 : f32 to vector<1x128xf32>
    %304 = arith.mulf %302, %303 : vector<1x128xf32>
    %305 = arith.index_cast %300 : i32 to index
    %c0_107 = arith.constant 0 : index
    %306 = vector.load %arg4[%305, %c0_107] : memref<16x128xf32, #tpu.memory_space<vmem>>, vector<1x128xf32>
    %307 = arith.addf %304, %306 : vector<1x128xf32>
    %c21 = arith.constant 21 : index
    %c0_108 = arith.constant 0 : index
    %308 = vector.load %arg5[%c21, %c0_108] : memref<32x128xf32, #tpu.memory_space<vmem>>, vector<1x128xf32>
    tpu.vector_store %arg5[%c21, %c0_108], %307 {strides = array<i32>} : memref<32x128xf32, #tpu.memory_space<vmem>>, vector<1x128xf32>,
    %c22_i32 = arith.constant 22 : i32
    %309 = arith.addi %0, %c22_i32 : i32
    %310 = arith.index_cast %309 : i32 to index
    %311 = memref.load %arg1[%310] : memref<32xi32, #tpu.memory_space<smem>>
    %c22_i32_109 = arith.constant 22 : i32
    %312 = arith.addi %0, %c22_i32_109 : i32
    %313 = arith.index_cast %312 : i32 to index
    %314 = memref.load %arg2[%313] : memref<32xi32, #tpu.memory_space<smem>>
    %315 = arith.index_cast %311 : i32 to index
    %c0_110 = arith.constant 0 : index
    %316 = vector.load %arg3[%315, %c0_110] : memref<64x128xf32, #tpu.memory_space<vmem>>, vector<1x128xf32>
    %cst_111 = arith.constant 11.3137083 : f32
    %317 = vector.broadcast %cst_111 : f32 to vector<1x128xf32>
    %318 = arith.mulf %316, %317 : vector<1x128xf32>
    %319 = arith.index_cast %314 : i32 to index
    %c0_112 = arith.constant 0 : index
    %320 = vector.load %arg4[%319, %c0_112] : memref<16x128xf32, #tpu.memory_space<vmem>>, vector<1x128xf32>
    %321 = arith.addf %318, %320 : vector<1x128xf32>
    %c22 = arith.constant 22 : index
    %c0_113 = arith.constant 0 : index
    %322 = vector.load %arg5[%c22, %c0_113] : memref<32x128xf32, #tpu.memory_space<vmem>>, vector<1x128xf32>
    tpu.vector_store %arg5[%c22, %c0_113], %321 {strides = array<i32>} : memref<32x128xf32, #tpu.memory_space<vmem>>, vector<1x128xf32>,
    %c23_i32 = arith.constant 23 : i32
    %323 = arith.addi %0, %c23_i32 : i32
    %324 = arith.index_cast %323 : i32 to index
    %325 = memref.load %arg1[%324] : memref<32xi32, #tpu.memory_space<smem>>
    %c23_i32_114 = arith.constant 23 : i32
    %326 = arith.addi %0, %c23_i32_114 : i32
    %327 = arith.index_cast %326 : i32 to index
    %328 = memref.load %arg2[%327] : memref<32xi32, #tpu.memory_space<smem>>
    %329 = arith.index_cast %325 : i32 to index
    %c0_115 = arith.constant 0 : index
    %330 = vector.load %arg3[%329, %c0_115] : memref<64x128xf32, #tpu.memory_space<vmem>>, vector<1x128xf32>
    %cst_116 = arith.constant 11.3137083 : f32
    %331 = vector.broadcast %cst_116 : f32 to vector<1x128xf32>
    %332 = arith.mulf %330, %331 : vector<1x128xf32>
    %333 = arith.index_cast %328 : i32 to index
    %c0_117 = arith.constant 0 : index
    %334 = vector.load %arg4[%333, %c0_117] : memref<16x128xf32, #tpu.memory_space<vmem>>, vector<1x128xf32>
    %335 = arith.addf %332, %334 : vector<1x128xf32>
    %c23 = arith.constant 23 : index
    %c0_118 = arith.constant 0 : index
    %336 = vector.load %arg5[%c23, %c0_118] : memref<32x128xf32, #tpu.memory_space<vmem>>, vector<1x128xf32>
    tpu.vector_store %arg5[%c23, %c0_118], %335 {strides = array<i32>} : memref<32x128xf32, #tpu.memory_space<vmem>>, vector<1x128xf32>,
    %c24_i32 = arith.constant 24 : i32
    %337 = arith.addi %0, %c24_i32 : i32
    %338 = arith.index_cast %337 : i32 to index
    %339 = memref.load %arg1[%338] : memref<32xi32, #tpu.memory_space<smem>>
    %c24_i32_119 = arith.constant 24 : i32
    %340 = arith.addi %0, %c24_i32_119 : i32
    %341 = arith.index_cast %340 : i32 to index
    %342 = memref.load %arg2[%341] : memref<32xi32, #tpu.memory_space<smem>>
    %343 = arith.index_cast %339 : i32 to index
    %c0_120 = arith.constant 0 : index
    %344 = vector.load %arg3[%343, %c0_120] : memref<64x128xf32, #tpu.memory_space<vmem>>, vector<1x128xf32>
    %cst_121 = arith.constant 11.3137083 : f32
    %345 = vector.broadcast %cst_121 : f32 to vector<1x128xf32>
    %346 = arith.mulf %344, %345 : vector<1x128xf32>
    %347 = arith.index_cast %342 : i32 to index
    %c0_122 = arith.constant 0 : index
    %348 = vector.load %arg4[%347, %c0_122] : memref<16x128xf32, #tpu.memory_space<vmem>>, vector<1x128xf32>
    %349 = arith.addf %346, %348 : vector<1x128xf32>
    %c24 = arith.constant 24 : index
    %c0_123 = arith.constant 0 : index
    %350 = vector.load %arg5[%c24, %c0_123] : memref<32x128xf32, #tpu.memory_space<vmem>>, vector<1x128xf32>
    tpu.vector_store %arg5[%c24, %c0_123], %349 {strides = array<i32>} : memref<32x128xf32, #tpu.memory_space<vmem>>, vector<1x128xf32>,
    %c25_i32 = arith.constant 25 : i32
    %351 = arith.addi %0, %c25_i32 : i32
    %352 = arith.index_cast %351 : i32 to index
    %353 = memref.load %arg1[%352] : memref<32xi32, #tpu.memory_space<smem>>
    %c25_i32_124 = arith.constant 25 : i32
    %354 = arith.addi %0, %c25_i32_124 : i32
    %355 = arith.index_cast %354 : i32 to index
    %356 = memref.load %arg2[%355] : memref<32xi32, #tpu.memory_space<smem>>
    %357 = arith.index_cast %353 : i32 to index
    %c0_125 = arith.constant 0 : index
    %358 = vector.load %arg3[%357, %c0_125] : memref<64x128xf32, #tpu.memory_space<vmem>>, vector<1x128xf32>
    %cst_126 = arith.constant 11.3137083 : f32
    %359 = vector.broadcast %cst_126 : f32 to vector<1x128xf32>
    %360 = arith.mulf %358, %359 : vector<1x128xf32>
    %361 = arith.index_cast %356 : i32 to index
    %c0_127 = arith.constant 0 : index
    %362 = vector.load %arg4[%361, %c0_127] : memref<16x128xf32, #tpu.memory_space<vmem>>, vector<1x128xf32>
    %363 = arith.addf %360, %362 : vector<1x128xf32>
    %c25 = arith.constant 25 : index
    %c0_128 = arith.constant 0 : index
    %364 = vector.load %arg5[%c25, %c0_128] : memref<32x128xf32, #tpu.memory_space<vmem>>, vector<1x128xf32>
    tpu.vector_store %arg5[%c25, %c0_128], %363 {strides = array<i32>} : memref<32x128xf32, #tpu.memory_space<vmem>>, vector<1x128xf32>,
    %c26_i32 = arith.constant 26 : i32
    %365 = arith.addi %0, %c26_i32 : i32
    %366 = arith.index_cast %365 : i32 to index
    %367 = memref.load %arg1[%366] : memref<32xi32, #tpu.memory_space<smem>>
    %c26_i32_129 = arith.constant 26 : i32
    %368 = arith.addi %0, %c26_i32_129 : i32
    %369 = arith.index_cast %368 : i32 to index
    %370 = memref.load %arg2[%369] : memref<32xi32, #tpu.memory_space<smem>>
    %371 = arith.index_cast %367 : i32 to index
    %c0_130 = arith.constant 0 : index
    %372 = vector.load %arg3[%371, %c0_130] : memref<64x128xf32, #tpu.memory_space<vmem>>, vector<1x128xf32>
    %cst_131 = arith.constant 11.3137083 : f32
    %373 = vector.broadcast %cst_131 : f32 to vector<1x128xf32>
    %374 = arith.mulf %372, %373 : vector<1x128xf32>
    %375 = arith.index_cast %370 : i32 to index
    %c0_132 = arith.constant 0 : index
    %376 = vector.load %arg4[%375, %c0_132] : memref<16x128xf32, #tpu.memory_space<vmem>>, vector<1x128xf32>
    %377 = arith.addf %374, %376 : vector<1x128xf32>
    %c26 = arith.constant 26 : index
    %c0_133 = arith.constant 0 : index
    %378 = vector.load %arg5[%c26, %c0_133] : memref<32x128xf32, #tpu.memory_space<vmem>>, vector<1x128xf32>
    tpu.vector_store %arg5[%c26, %c0_133], %377 {strides = array<i32>} : memref<32x128xf32, #tpu.memory_space<vmem>>, vector<1x128xf32>,
    %c27_i32 = arith.constant 27 : i32
    %379 = arith.addi %0, %c27_i32 : i32
    %380 = arith.index_cast %379 : i32 to index
    %381 = memref.load %arg1[%380] : memref<32xi32, #tpu.memory_space<smem>>
    %c27_i32_134 = arith.constant 27 : i32
    %382 = arith.addi %0, %c27_i32_134 : i32
    %383 = arith.index_cast %382 : i32 to index
    %384 = memref.load %arg2[%383] : memref<32xi32, #tpu.memory_space<smem>>
    %385 = arith.index_cast %381 : i32 to index
    %c0_135 = arith.constant 0 : index
    %386 = vector.load %arg3[%385, %c0_135] : memref<64x128xf32, #tpu.memory_space<vmem>>, vector<1x128xf32>
    %cst_136 = arith.constant 11.3137083 : f32
    %387 = vector.broadcast %cst_136 : f32 to vector<1x128xf32>
    %388 = arith.mulf %386, %387 : vector<1x128xf32>
    %389 = arith.index_cast %384 : i32 to index
    %c0_137 = arith.constant 0 : index
    %390 = vector.load %arg4[%389, %c0_137] : memref<16x128xf32, #tpu.memory_space<vmem>>, vector<1x128xf32>
    %391 = arith.addf %388, %390 : vector<1x128xf32>
    %c27 = arith.constant 27 : index
    %c0_138 = arith.constant 0 : index
    %392 = vector.load %arg5[%c27, %c0_138] : memref<32x128xf32, #tpu.memory_space<vmem>>, vector<1x128xf32>
    tpu.vector_store %arg5[%c27, %c0_138], %391 {strides = array<i32>} : memref<32x128xf32, #tpu.memory_space<vmem>>, vector<1x128xf32>,
    %c28_i32 = arith.constant 28 : i32
    %393 = arith.addi %0, %c28_i32 : i32
    %394 = arith.index_cast %393 : i32 to index
    %395 = memref.load %arg1[%394] : memref<32xi32, #tpu.memory_space<smem>>
    %c28_i32_139 = arith.constant 28 : i32
    %396 = arith.addi %0, %c28_i32_139 : i32
    %397 = arith.index_cast %396 : i32 to index
    %398 = memref.load %arg2[%397] : memref<32xi32, #tpu.memory_space<smem>>
    %399 = arith.index_cast %395 : i32 to index
    %c0_140 = arith.constant 0 : index
    %400 = vector.load %arg3[%399, %c0_140] : memref<64x128xf32, #tpu.memory_space<vmem>>, vector<1x128xf32>
    %cst_141 = arith.constant 11.3137083 : f32
    %401 = vector.broadcast %cst_141 : f32 to vector<1x128xf32>
    %402 = arith.mulf %400, %401 : vector<1x128xf32>
    %403 = arith.index_cast %398 : i32 to index
    %c0_142 = arith.constant 0 : index
    %404 = vector.load %arg4[%403, %c0_142] : memref<16x128xf32, #tpu.memory_space<vmem>>, vector<1x128xf32>
    %405 = arith.addf %402, %404 : vector<1x128xf32>
    %c28 = arith.constant 28 : index
    %c0_143 = arith.constant 0 : index
    %406 = vector.load %arg5[%c28, %c0_143] : memref<32x128xf32, #tpu.memory_space<vmem>>, vector<1x128xf32>
    tpu.vector_store %arg5[%c28, %c0_143], %405 {strides = array<i32>} : memref<32x128xf32, #tpu.memory_space<vmem>>, vector<1x128xf32>,
    %c29_i32 = arith.constant 29 : i32
    %407 = arith.addi %0, %c29_i32 : i32
    %408 = arith.index_cast %407 : i32 to index
    %409 = memref.load %arg1[%408] : memref<32xi32, #tpu.memory_space<smem>>
    %c29_i32_144 = arith.constant 29 : i32
    %410 = arith.addi %0, %c29_i32_144 : i32
    %411 = arith.index_cast %410 : i32 to index
    %412 = memref.load %arg2[%411] : memref<32xi32, #tpu.memory_space<smem>>
    %413 = arith.index_cast %409 : i32 to index
    %c0_145 = arith.constant 0 : index
    %414 = vector.load %arg3[%413, %c0_145] : memref<64x128xf32, #tpu.memory_space<vmem>>, vector<1x128xf32>
    %cst_146 = arith.constant 11.3137083 : f32
    %415 = vector.broadcast %cst_146 : f32 to vector<1x128xf32>
    %416 = arith.mulf %414, %415 : vector<1x128xf32>
    %417 = arith.index_cast %412 : i32 to index
    %c0_147 = arith.constant 0 : index
    %418 = vector.load %arg4[%417, %c0_147] : memref<16x128xf32, #tpu.memory_space<vmem>>, vector<1x128xf32>
    %419 = arith.addf %416, %418 : vector<1x128xf32>
    %c29 = arith.constant 29 : index
    %c0_148 = arith.constant 0 : index
    %420 = vector.load %arg5[%c29, %c0_148] : memref<32x128xf32, #tpu.memory_space<vmem>>, vector<1x128xf32>
    tpu.vector_store %arg5[%c29, %c0_148], %419 {strides = array<i32>} : memref<32x128xf32, #tpu.memory_space<vmem>>, vector<1x128xf32>,
    %c30_i32 = arith.constant 30 : i32
    %421 = arith.addi %0, %c30_i32 : i32
    %422 = arith.index_cast %421 : i32 to index
    %423 = memref.load %arg1[%422] : memref<32xi32, #tpu.memory_space<smem>>
    %c30_i32_149 = arith.constant 30 : i32
    %424 = arith.addi %0, %c30_i32_149 : i32
    %425 = arith.index_cast %424 : i32 to index
    %426 = memref.load %arg2[%425] : memref<32xi32, #tpu.memory_space<smem>>
    %427 = arith.index_cast %423 : i32 to index
    %c0_150 = arith.constant 0 : index
    %428 = vector.load %arg3[%427, %c0_150] : memref<64x128xf32, #tpu.memory_space<vmem>>, vector<1x128xf32>
    %cst_151 = arith.constant 11.3137083 : f32
    %429 = vector.broadcast %cst_151 : f32 to vector<1x128xf32>
    %430 = arith.mulf %428, %429 : vector<1x128xf32>
    %431 = arith.index_cast %426 : i32 to index
    %c0_152 = arith.constant 0 : index
    %432 = vector.load %arg4[%431, %c0_152] : memref<16x128xf32, #tpu.memory_space<vmem>>, vector<1x128xf32>
    %433 = arith.addf %430, %432 : vector<1x128xf32>
    %c30 = arith.constant 30 : index
    %c0_153 = arith.constant 0 : index
    %434 = vector.load %arg5[%c30, %c0_153] : memref<32x128xf32, #tpu.memory_space<vmem>>, vector<1x128xf32>
    tpu.vector_store %arg5[%c30, %c0_153], %433 {strides = array<i32>} : memref<32x128xf32, #tpu.memory_space<vmem>>, vector<1x128xf32>,
    %c31_i32 = arith.constant 31 : i32
    %435 = arith.addi %0, %c31_i32 : i32
    %436 = arith.index_cast %435 : i32 to index
    %437 = memref.load %arg1[%436] : memref<32xi32, #tpu.memory_space<smem>>
    %c31_i32_154 = arith.constant 31 : i32
    %438 = arith.addi %0, %c31_i32_154 : i32
    %439 = arith.index_cast %438 : i32 to index
    %440 = memref.load %arg2[%439] : memref<32xi32, #tpu.memory_space<smem>>
    %441 = arith.index_cast %437 : i32 to index
    %c0_155 = arith.constant 0 : index
    %442 = vector.load %arg3[%441, %c0_155] : memref<64x128xf32, #tpu.memory_space<vmem>>, vector<1x128xf32>
    %cst_156 = arith.constant 11.3137083 : f32
    %443 = vector.broadcast %cst_156 : f32 to vector<1x128xf32>
    %444 = arith.mulf %442, %443 : vector<1x128xf32>
    %445 = arith.index_cast %440 : i32 to index
    %c0_157 = arith.constant 0 : index
    %446 = vector.load %arg4[%445, %c0_157] : memref<16x128xf32, #tpu.memory_space<vmem>>, vector<1x128xf32>
    %447 = arith.addf %444, %446 : vector<1x128xf32>
    %c31 = arith.constant 31 : index
    %c0_158 = arith.constant 0 : index
    %448 = vector.load %arg5[%c31, %c0_158] : memref<32x128xf32, #tpu.memory_space<vmem>>, vector<1x128xf32>
    tpu.vector_store %arg5[%c31, %c0_158], %447 {strides = array<i32>} : memref<32x128xf32, #tpu.memory_space<vmem>>, vector<1x128xf32>,
    return
  }
  func.func @transform_0(%arg0: i32, %arg1: memref<32xi32, #tpu.memory_space<smem>>, %arg2: memref<32xi32, #tpu.memory_space<smem>>) -> (i32, i32) {
    %c0_i32 = arith.constant 0 : i32
    %c0_i32_0 = arith.constant 0 : i32
    %c0_i32_1 = arith.constant 0 : i32
    return %c0_i32, %c0_i32_0 : i32, i32
  }
  func.func @transform_1(%arg0: i32, %arg1: memref<32xi32, #tpu.memory_space<smem>>, %arg2: memref<32xi32, #tpu.memory_space<smem>>) -> (i32, i32) {
    %c0_i32 = arith.constant 0 : i32
    %c0_i32_0 = arith.constant 0 : i32
    %c0_i32_1 = arith.constant 0 : i32
    return %c0_i32, %c0_i32_0 : i32, i32
  }
  func.func @transform_2(%arg0: i32, %arg1: memref<32xi32, #tpu.memory_space<smem>>, %arg2: memref<32xi32, #tpu.memory_space<smem>>) -> (i32, i32) {
    %c0_i32 = arith.constant 0 : i32
    %c0_i32_0 = arith.constant 0 : i32
    return %arg0, %c0_i32 : i32, i32
  }
}

</mosaic_0001>

<bundles_post_ra>
// kernel: tpu_custom_call.1
= control target key start
LH: loop header
LB: loop body
LE: loop exit
PB: predicated region body
PF: predicated region fallthrough
CT: control target
= control target key end

     0   :  { %s769_s0 = inlined_call_operand.hbm [shape: s32[32], index: 0, kind: input, shape index: {}]   ;;  %s770_s2 = inlined_call_operand.hbm [shape: f32[64,128], index: 2, kind: input, shape index: {}]   ;;  %s771_s3 = inlined_call_operand.hbm [shape: f32[16,128], index: 3, kind: input, shape index: {}]   ;;  %s772_s4 = inlined_call_operand.hbm [shape: f32[32,128], index: 4, kind: output, shape index: {}]   ;;  %s773_s1 = inlined_call_operand.vmem [shape: s32[32], index: 1, kind: input, shape index: {}]  }
   0x1   :  { %s521_s17 = scalar_lea.hbm %s769_s0, 16 }
   0x2   :  { %p522_p0 = scmp.ne.s32.totalorder %s769_s0, %s521_s17  ;;  %p525_p1 = scmp.lt.u32.totalorder %s521_s17, %s769_s0 }
   0x4   :  { %p527_p2 = pnand %p525_p1, %p522_p0 }
   0x6   :  { %530 = shalt.err (!%p527_p2)  }
   0x7   :  { %s617_s22 = smov [#allocation3]   ;;  %s11_s27 = sshll.u32 %s773_s1, 4  ;;  %s12_s27 = int_to_ptr.vmem [resolvable:$true] %s11_s27 }
   0x8   :  { %10 = dma.hbm_to_smem %s769_s0, 16, %s617_s22, [#allocation2] }
   0x9   :  { %s531_s28 = scalar_lea.vmem %s12_s27, 16  ;;  %p536_p4 = scmp.lt.s32.totalorder %s12_s27, %s12_s27 }
   0xa   :  { %p532_p3 = scmp.ne.s32.totalorder %s12_s27, %s531_s28  ;;  %p537_p5 = scmp.lt.s32.totalorder %s531_s28, %s531_s28 }
   0xc   :  { %p538_p6 = por %p537_p5, %p536_p4 }
   0xe   :  { %p539_p7 = pnand %p538_p6, %p532_p3 }
  0x10   :  { %542 = shalt.err (!%p539_p7)  }
  0x11   :  { %s618_s29 = smov [#allocation4]  }
  0x12   :  { %14 = dma.vmem_to_smem %s12_s27, 16, %s618_s29, [#allocation2] }
  0x13   :  { %609 = dma.done.wait [#allocation2], 32 }
  0x14   :  { %610 = vsyncadd [#allocation2], 4294967264 }
  0x15   :  { %16 = sfence }
  0x16   :  { %17 = vsyncpa [#allocation6], 0 }
  0x17   :  { %18 = vsyncpa [#allocation9], 0 }
  0x18   :  { %19 = vsyncpa [#allocation7], 0  ;;  %s619_s0 = smov [#allocation5]   ;;  %s543_s6 = scalar_lea.hbm %s770_s2, 1024 }
  0x19   :  { %s25_s30 = sshll.u32 %s619_s0, 4  ;;  %p544_p8 = scmp.ne.s32.totalorder %s770_s2, %s543_s6  ;;  %s26_s30 = int_to_ptr.vmem [resolvable:$true] %s25_s30 }
  0x1a   :  { %p547_p9 = scmp.lt.u32.totalorder %s543_s6, %s770_s2 }
  0x1c   :  { %p549_p10 = pnand %p547_p9, %p544_p8 }
  0x1e   :  { %552 = shalt.err (!%p549_p10)
}
  0x1f   :  { %s553_s11 = scalar_lea.vmem %s26_s30, 1024  ;;  %p558_p12 = scmp.lt.s32.totalorder %s26_s30, %s26_s30 }
  0x20   :  { %p554_p11 = scmp.ne.s32.totalorder %s26_s30, %s553_s11  ;;  %p559_p13 = scmp.lt.s32.totalorder %s553_s11, %s553_s11 }
  0x22   :  { %p560_p0 = por %p559_p13, %p558_p12 }
  0x24   :  { %p561_p1 = pnand %p560_p0, %p554_p11 }
  0x26   :  { %564 = shalt.err (!%p561_p1)
}
  0x27   :  { %s620_s12 = smov 128   ;;  %s621_s13 = smov 8  }
  0x28   :  { %31 = dma.hbm_to_vmem [thread:$0]  %s770_s2, 1024, %s26_s30, [#allocation6], %s620_s12, %s620_s12, %s621_s13  }
  0x29   :  { %s622_s16 = smov [#allocation8]   ;;  %s565_s20 = scalar_lea.hbm %s771_s3, 256 }
  0x2a   :  { %s37_s17 = sshll.u32 %s622_s16, 4  ;;  %p566_p2 = scmp.ne.s32.totalorder %s771_s3, %s565_s20  ;;  %s38_s17 = int_to_ptr.vmem [resolvable:$true] %s37_s17 }
  0x2b   :  { %p569_p3 = scmp.lt.u32.totalorder %s565_s20, %s771_s3 }
  0x2d   :  { %p571_p4 = pnand %p569_p3, %p566_p2 }
  0x2f   :  { %574 = shalt.err (!%p571_p4)
}
  0x30   :  { %s575_s25 = scalar_lea.vmem %s38_s17, 256  ;;  %p580_p6 = scmp.lt.s32.totalorder %s38_s17, %s38_s17 }
  0x31   :  { %p576_p5 = scmp.ne.s32.totalorder %s38_s17, %s575_s25  ;;  %p581_p7 = scmp.lt.s32.totalorder %s575_s25, %s575_s25 }
  0x33   :  { %p582_p8 = por %p581_p7, %p580_p6 }
  0x35   :  { %p583_p9 = pnand %p582_p8, %p576_p5 }
  0x37   :  { %586 = shalt.err (!%p583_p9)
}
  0x38   :  { %43 = dma.hbm_to_vmem [thread:$0]  %s771_s3, 256, %s38_s17, [#allocation9], %s620_s12, %s620_s12, %s621_s13  }
  0x39   :  { %611 = dma.done.wait [#allocation6], 1024  }
  0x3a   :  { %612 = vsyncadd [#allocation6], 4294966272 }
  0x3b   :  { %613 = dma.done.wait [#allocation9], 256  }
  0x3c   :  { %614 = vsyncadd [#allocation9], 4294967040  ;;  %s51_s27 = sld [smem:[#allocation3]]  ;;  %s452_s29 = sld [smem:[#allocation3 + $0x1]] }
  0x3d   :  { %s52_s28 = sld [smem:[#allocation4]]  ;;  %s453_s0 = sld [smem:[#allocation4 + $0x1]] }
  0x3e   :  { %s454_s30 = sld [smem:[#allocation3 + $0x2]]  ;;  %s456_s5 = sld [smem:[#allocation3 + $0x3]] }
  0x3f   :  { %s455_s1 = sld [smem:[#allocation4 + $0x2]]  ;;  %s457_s6 = sld [smem:[#allocation4 + $0x3]] }
  0x40   :  { %s694_s7 = sld [smem:[#allocation3 + $0x4]]  ;;  %s698_s9 = sld [smem:[#allocation3 + $0x5]] }
  0x41   :  { %s696_s8 = sld [smem:[#allocation4 + $0x4]]  ;;  %s700_s10 = sld [smem:[#allocation4 + $0x5]] }
  0x42   :  { %s53_s3 = scalar_lea.vmem [#allocation5], %s51_s27  ;;  %s63_s14 = scalar_lea.vmem [#allocation5], %s452_s29 }
  0x43   :  { %v54_v0 = vld [vmem:[%s53_s3] sm:$0x1]  ;;  %s56_s11 = scalar_lea.vmem [#allocation8], %s52_s28  ;;  %s66_s15 = scalar_lea.vmem [#allocation8], %s453_s0 }
  0x44   :  { %v57_v1 = vld [vmem:[%s56_s11] sm:$0x1]  ;;  %v55_v2 = vmul.f32 11.313708, %v54_v0  ;;  %s73_s16 = scalar_lea.vmem [#allocation5], %s454_s30  ;;  %s83_s18 = scalar_lea.vmem [#allocation5], %s456_s5 }
  0x45   :  { %v64_v3 = vld [vmem:[%s63_s14] sm:$0x1]  ;;  %s76_s17 = scalar_lea.vmem [#allocation8], %s455_s1  ;;  %s86_s19 = scalar_lea.vmem [#allocation8], %s457_s6 }
  0x46   :  { %v67_v4 = vld [vmem:[%s66_s15] sm:$0x1]  ;;  %v65_v5 = vmul.f32 11.313708, %v64_v3  ;;  %v58_v6 = vadd.f32 %v57_v1, %v55_v2  ;;  %s93_s20 = scalar_lea.vmem [#allocation5], %s694_s7  ;;  %s103_s22 = scalar_lea.vmem [#allocation5], %s698_s9 }
  0x47   :  { %v74_v7 = vld [vmem:[%s73_s16] sm:$0x1]  ;;  %s96_s21 = scalar_lea.vmem [#allocation8], %s696_s8  ;;  %s106_s23 = scalar_lea.vmem [#allocation8], %s700_s10 }
  0x48   :  { %v77_v8 = vld [vmem:[%s76_s17] sm:$0x1]  ;;  %v68_v9 = vadd.f32 %v67_v4, %v65_v5  ;;  %v75_v10 = vmul.f32 11.313708, %v74_v7  ;;  %59 = vst [vmem:[#allocation10] sm:$0x1] %v58_v6 }
  0x49   :  { %v84_v11 = vld [vmem:[%s83_s18] sm:$0x1]  ;;  %s462_s24 = sld [smem:[#allocation3 + $0x6]]  ;;  %s464_s2 = sld [smem:[#allocation3 + $0x7]] }
  0x4a   :  { %v87_v12 = vld [vmem:[%s86_s19] sm:$0x1]  ;;  %v85_v13 = vmul.f32 11.313708, %v84_v11  ;;  %69 = vst [vmem:[#allocation10 + $0x1] sm:$0x1] %v68_v9  ;;  %v78_v14 = vadd.f32 %v77_v8, %v75_v10 }
  0x4b   :  { %v94_v15 = vld [vmem:[%s93_s20] sm:$0x1]  ;;  %s463_s25 = sld [smem:[#allocation4 + $0x6]]  ;;  %s465_s26 = sld [smem:[#allocation4 + $0x7]] }
  0x4c   :  { %v97_v16 = vld [vmem:[%s96_s21] sm:$0x1]  ;;  %v88_v17 = vadd.f32 %v87_v12, %v85_v13  ;;  %v95_v18 = vmul.f32 11.313708, %v94_v15  ;;  %79 = vst [vmem:[#allocation10 + $0x2] sm:$0x1] %v78_v14 }
  0x4d   :  { %v104_v19 = vld [vmem:[%s103_s22] sm:$0x1]  ;;  %s466_s27 = sld [smem:[#allocation3 + $0x8]]  ;;  %s468_s29 = sld [smem:[#allocation3 + $0x9]] }
  0x4e   :  { %v107_v20 = vld [vmem:[%s106_s23] sm:$0x1]  ;;  %v105_v21 = vmul.f32 11.313708, %v104_v19  ;;  %89 = vst [vmem:[#allocation10 + $0x3] sm:$0x1] %v88_v17  ;;  %v98_v22 = vadd.f32 %v97_v16, %v95_v18 }
  0x4f   :  { %s467_s28 = sld [smem:[#allocation4 + $0x8]]  ;;  %s469_s0 = sld [smem:[#allocation4 + $0x9]] }
  0x50   :  { %v108_v23 = vadd.f32 %v107_v20, %v105_v21  ;;  %99 = vst [vmem:[#allocation10 + $0x4] sm:$0x1] %v98_v22  ;;  %s706_s30 = sld [smem:[#allocation3 + $0xa]]  ;;  %s710_s5 = sld [smem:[#allocation3 + $0xb]] }
  0x51   :  { %s708_s1 = sld [smem:[#allocation4 + $0xa]]  ;;  %s712_s6 = sld [smem:[#allocation4 + $0xb]] }
  0x52   :  { %109 = vst [vmem:[#allocation10 + $0x5] sm:$0x1] %v108_v23  ;;  %s113_s7 = scalar_lea.vmem [#allocation5], %s462_s24  ;;  %s116_s8 = scalar_lea.vmem [#allocation8], %s463_s25 }
  0x53   :  { %v114_v24 = vld [vmem:[%s113_s7] sm:$0x1]  ;;  %s123_s9 = scalar_lea.vmem [#allocation5], %s464_s2  ;;  %s126_s10 = scalar_lea.vmem [#allocation8], %s465_s26 }
  0x54   :  { %v117_v25 = vld [vmem:[%s116_s8] sm:$0x1]  ;;  %v115_v26 = vmul.f32 11.313708, %v114_v24  ;;  %s133_s3 = scalar_lea.vmem [#allocation5], %s466_s27  ;;  %s143_s14 = scalar_lea.vmem [#allocation5], %s468_s29 }
  0x55   :  { %v124_v27 = vld [vmem:[%s123_s9] sm:$0x1]  ;;  %s136_s11 = scalar_lea.vmem [#allocation8], %s467_s28  ;;  %s146_s15 = scalar_lea.vmem [#allocation8], %s469_s0 }
  0x56   :  { %v127_v28 = vld [vmem:[%s126_s10] sm:$0x1]  ;;  %v125_v29 = vmul.f32 11.313708, %v124_v27  ;;  %v118_v30 = vadd.f32 %v117_v25, %v115_v26  ;;  %s153_s16 = scalar_lea.vmem [#allocation5], %s706_s30  ;;  %s163_s18 = scalar_lea.vmem [#allocation5], %s710_s5 }
  0x57   :  { %v134_v31 = vld [vmem:[%s133_s3] sm:$0x1]  ;;  %s156_s17 = scalar_lea.vmem [#allocation8], %s708_s1  ;;  %s166_s19 = scalar_lea.vmem [#allocation8], %s712_s6 }
  0x58   :  { %v137_v32 = vld [vmem:[%s136_s11] sm:$0x1]  ;;  %v128_v33 = vadd.f32 %v127_v28, %v125_v29  ;;  %v135_v34 = vmul.f32 11.313708, %v134_v31  ;;  %119 = vst [vmem:[#allocation10 + $0x6] sm:$0x1] %v118_v30 }
  0x59   :  { %v144_v35 = vld [vmem:[%s143_s14] sm:$0x1]  ;;  %s474_s20 = sld [smem:[#allocation3 + $0xc]]  ;;  %s476_s22 = sld [smem:[#allocation3 + $0xd]] }
  0x5a   :  { %v147_v36 = vld [vmem:[%s146_s15] sm:$0x1]  ;;  %v145_v37 = vmul.f32 11.313708, %v144_v35  ;;  %129 = vst [vmem:[#allocation10 + $0x7] sm:$0x1] %v128_v33  ;;  %v138_v38 = vadd.f32 %v137_v32, %v135_v34 }
  0x5b   :  { %v154_v39 = vld [vmem:[%s153_s16] sm:$0x1]  ;;  %s475_s21 = sld [smem:[#allocation4 + $0xc]]  ;;  %s477_s23 = sld [smem:[#allocation4 + $0xd]] }
  0x5c   :  { %v157_v40 = vld [vmem:[%s156_s17] sm:$0x1]  ;;  %v148_v41 = vadd.f32 %v147_v36, %v145_v37  ;;  %v155_v42 = vmul.f32 11.313708, %v154_v39  ;;  %139 = vst [vmem:[#allocation10 + $0x8] sm:$0x1] %v138_v38 }
  0x5d   :  { %v164_v43 = vld [vmem:[%s163_s18] sm:$0x1]  ;;  %s478_s24 = sld [smem:[#allocation3 + $0xe]]  ;;  %s480_s2 = sld [smem:[#allocation3 + $0xf]] }
  0x5e   :  { %v167_v44 = vld [vmem:[%s166_s19] sm:$0x1]  ;;  %v165_v45 = vmul.f32 11.313708, %v164_v43  ;;  %149 = vst [vmem:[#allocation10 + $0x9] sm:$0x1] %v148_v41  ;;  %v158_v46 = vadd.f32 %v157_v40, %v155_v42 }
  0x5f   :  { %s479_s25 = sld [smem:[#allocation4 + $0xe]]  ;;  %s481_s26 = sld [smem:[#allocation4 + $0xf]] }
  0x60   :  { %v168_v47 = vadd.f32 %v167_v44, %v165_v45  ;;  %159 = vst [vmem:[#allocation10 + $0xa] sm:$0x1] %v158_v46  ;;  %s718_s27 = sld [smem:[#allocation3 + $0x10]]  ;;  %s722_s29 = sld [smem:[#allocation3 + $0x11]] }
  0x61   :  { %s720_s28 = sld [smem:[#allocation4 + $0x10]]  ;;  %s724_s0 = sld [smem:[#allocation4 + $0x11]] }
  0x62   :  { %169 = vst [vmem:[#allocation10 + $0xb] sm:$0x1] %v168_v47  ;;  %s173_s30 = scalar_lea.vmem [#allocation5], %s474_s20  ;;  %s176_s1 = scalar_lea.vmem [#allocation8], %s475_s21 }
  0x63   :  { %v174_v48 = vld [vmem:[%s173_s30] sm:$0x1]  ;;  %s183_s5 = scalar_lea.vmem [#allocation5], %s476_s22  ;;  %s186_s6 = scalar_lea.vmem [#allocation8], %s477_s23 }
  0x64   :  { %v177_v49 = vld [vmem:[%s176_s1] sm:$0x1]  ;;  %v175_v50 = vmul.f32 11.313708, %v174_v48  ;;  %s193_s7 = scalar_lea.vmem [#allocation5], %s478_s24  ;;  %s203_s9 = scalar_lea.vmem [#allocation5], %s480_s2 }
  0x65   :  { %v184_v51 = vld [vmem:[%s183_s5] sm:$0x1]  ;;  %s196_s8 = scalar_lea.vmem [#allocation8], %s479_s25  ;;  %s206_s10 = scalar_lea.vmem [#allocation8], %s481_s26 }
  0x66   :  { %v187_v52 = vld [vmem:[%s186_s6] sm:$0x1]  ;;  %v185_v53 = vmul.f32 11.313708, %v184_v51  ;;  %v178_v54 = vadd.f32 %v177_v49, %v175_v50  ;;  %s213_s3 = scalar_lea.vmem [#allocation5], %s718_s27  ;;  %s223_s14 = scalar_lea.vmem [#allocation5], %s722_s29 }
  0x67   :  { %v194_v55 = vld [vmem:[%s193_s7] sm:$0x1]  ;;  %s216_s11 = scalar_lea.vmem [#allocation8], %s720_s28  ;;  %s226_s15 = scalar_lea.vmem [#allocation8], %s724_s0 }
  0x68   :  { %v197_v56 = vld [vmem:[%s196_s8] sm:$0x1]  ;;  %v188_v57 = vadd.f32 %v187_v52, %v185_v53  ;;  %v195_v58 = vmul.f32 11.313708, %v194_v55  ;;  %179 = vst [vmem:[#allocation10 + $0xc] sm:$0x1] %v178_v54 }
  0x69   :  { %v204_v59 = vld [vmem:[%s203_s9] sm:$0x1]  ;;  %s486_s16 = sld [smem:[#allocation3 + $0x12]]  ;;  %s488_s18 = sld [smem:[#allocation3 + $0x13]] }
  0x6a   :  { %v207_v60 = vld [vmem:[%s206_s10] sm:$0x1]  ;;  %v205_v61 = vmul.f32 11.313708, %v204_v59  ;;  %189 = vst [vmem:[#allocation10 + $0xd] sm:$0x1] %v188_v57  ;;  %v198_v62 = vadd.f32 %v197_v56, %v195_v58 }
  0x6b   :  { %v214_v63 = vld [vmem:[%s213_s3] sm:$0x1]  ;;  %s487_s17 = sld [smem:[#allocation4 + $0x12]]  ;;  %s489_s19 = sld [smem:[#allocation4 + $0x13]] }
  0x6c   :  { %v217_v0 = vld [vmem:[%s216_s11] sm:$0x1]  ;;  %v208_v1 = vadd.f32 %v207_v60, %v205_v61  ;;  %v215_v2 = vmul.f32 11.313708, %v214_v63  ;;  %199 = vst [vmem:[#allocation10 + $0xe] sm:$0x1] %v198_v62 }
  0x6d   :  { %v224_v3 = vld [vmem:[%s223_s14] sm:$0x1]  ;;  %s490_s20 = sld [smem:[#allocation3 + $0x14]]  ;;  %s492_s22 = sld [smem:[#allocation3 + $0x15]] }
  0x6e   :  { %v227_v4 = vld [vmem:[%s226_s15] sm:$0x1]  ;;  %v225_v5 = vmul.f32 11.313708, %v224_v3  ;;  %209 = vst [vmem:[#allocation10 + $0xf] sm:$0x1] %v208_v1  ;;  %v218_v6 = vadd.f32 %v217_v0, %v215_v2 }
  0x6f   :  { %s491_s21 = sld [smem:[#allocation4 + $0x14]]  ;;  %s493_s23 = sld [smem:[#allocation4 + $0x15]] }
  0x70   :  { %v228_v7 = vadd.f32 %v227_v4, %v225_v5  ;;  %219 = vst [vmem:[#allocation10 + $0x10] sm:$0x1] %v218_v6  ;;  %s730_s24 = sld [smem:[#allocation3 + $0x16]]  ;;  %s734_s2 = sld [smem:[#allocation3 + $0x17]] }
  0x71   :  { %s732_s25 = sld [smem:[#allocation4 + $0x16]]  ;;  %s736_s26 = sld [smem:[#allocation4 + $0x17]] }
  0x72   :  { %229 = vst [vmem:[#allocation10 + $0x11] sm:$0x1] %v228_v7  ;;  %s233_s27 = scalar_lea.vmem [#allocation5], %s486_s16  ;;  %s236_s28 = scalar_lea.vmem [#allocation8], %s487_s17 }
  0x73   :  { %v234_v8 = vld [vmem:[%s233_s27] sm:$0x1]  ;;  %s243_s29 = scalar_lea.vmem [#allocation5], %s488_s18  ;;  %s246_s0 = scalar_lea.vmem [#allocation8], %s489_s19 }
  0x74   :  { %v237_v9 = vld [vmem:[%s236_s28] sm:$0x1]  ;;  %v235_v10 = vmul.f32 11.313708, %v234_v8  ;;  %s253_s30 = scalar_lea.vmem [#allocation5], %s490_s20  ;;  %s263_s5 = scalar_lea.vmem [#allocation5], %s492_s22 }
  0x75   :  { %v244_v11 = vld [vmem:[%s243_s29] sm:$0x1]  ;;  %s256_s1 = scalar_lea.vmem [#allocation8], %s491_s21  ;;  %s266_s6 = scalar_lea.vmem [#allocation8], %s493_s23 }
  0x76   :  { %v247_v12 = vld [vmem:[%s246_s0] sm:$0x1]  ;;  %v245_v13 = vmul.f32 11.313708, %v244_v11  ;;  %v238_v14 = vadd.f32 %v237_v9, %v235_v10  ;;  %s273_s7 = scalar_lea.vmem [#allocation5], %s730_s24  ;;  %s283_s9 = scalar_lea.vmem [#allocation5], %s734_s2 }
  0x77   :  { %v254_v15 = vld [vmem:[%s253_s30] sm:$0x1]  ;;  %s276_s8 = scalar_lea.vmem [#allocation8], %s732_s25  ;;  %s286_s10 = scalar_lea.vmem [#allocation8], %s736_s26 }
  0x78   :  { %v257_v16 = vld [vmem:[%s256_s1] sm:$0x1]  ;;  %v248_v17 = vadd.f32 %v247_v12, %v245_v13  ;;  %v255_v18 = vmul.f32 11.313708, %v254_v15  ;;  %239 = vst [vmem:[#allocation10 + $0x12] sm:$0x1] %v238_v14 }
  0x79   :  { %v264_v19 = vld [vmem:[%s263_s5] sm:$0x1]  ;;  %s498_s3 = sld [smem:[#allocation3 + $0x18]]  ;;  %s500_s14 = sld [smem:[#allocation3 + $0x19]] }
  0x7a   :  { %v267_v20 = vld [vmem:[%s266_s6] sm:$0x1]  ;;  %v265_v21 = vmul.f32 11.313708, %v264_v19  ;;  %249 = vst [vmem:[#allocation10 + $0x13] sm:$0x1] %v248_v17  ;;  %v258_v22 = vadd.f32 %v257_v16, %v255_v18 }
  0x7b   :  { %v274_v23 = vld [vmem:[%s273_s7] sm:$0x1]  ;;  %s499_s11 = sld [smem:[#allocation4 + $0x18]]  ;;  %s501_s15 = sld [smem:[#allocation4 + $0x19]] }
  0x7c   :  { %v277_v24 = vld [vmem:[%s276_s8] sm:$0x1]  ;;  %v268_v25 = vadd.f32 %v267_v20, %v265_v21  ;;  %v275_v26 = vmul.f32 11.313708, %v274_v23  ;;  %259 = vst [vmem:[#allocation10 + $0x14] sm:$0x1] %v258_v22 }
  0x7d   :  { %v284_v27 = vld [vmem:[%s283_s9] sm:$0x1]  ;;  %s502_s16 = sld [smem:[#allocation3 + $0x1a]]  ;;  %s504_s18 = sld [smem:[#allocation3 + $0x1b]] }
  0x7e   :  { %v287_v28 = vld [vmem:[%s286_s10] sm:$0x1]  ;;  %v285_v29 = vmul.f32 11.313708, %v284_v27  ;;  %269 = vst [vmem:[#allocation10 + $0x15] sm:$0x1] %v268_v25  ;;  %v278_v30 = vadd.f32 %v277_v24, %v275_v26 }
  0x7f   :  { %s503_s17 = sld [smem:[#allocation4 + $0x1a]]  ;;  %s505_s19 = sld [smem:[#allocation4 + $0x1b]] }
  0x80   :  { %v288_v31 = vadd.f32 %v287_v28, %v285_v29  ;;  %279 = vst [vmem:[#allocation10 + $0x16] sm:$0x1] %v278_v30  ;;  %s742_s20 = sld [smem:[#allocation3 + $0x1c]]  ;;  %s746_s22 = sld [smem:[#allocation3 + $0x1d]] }
  0x81   :  { %s744_s21 = sld [smem:[#allocation4 + $0x1c]]  ;;  %s748_s23 = sld [smem:[#allocation4 + $0x1d]] }
  0x82   :  { %289 = vst [vmem:[#allocation10 + $0x17] sm:$0x1] %v288_v31  ;;  %s293_s24 = scalar_lea.vmem [#allocation5], %s498_s3  ;;  %s296_s25 = scalar_lea.vmem [#allocation8], %s499_s11 }
  0x83   :  { %v294_v32 = vld [vmem:[%s293_s24] sm:$0x1]  ;;  %s303_s2 = scalar_lea.vmem [#allocation5], %s500_s14  ;;  %s306_s26 = scalar_lea.vmem [#allocation8], %s501_s15 }
  0x84   :  { %v297_v33 = vld [vmem:[%s296_s25] sm:$0x1]  ;;  %v295_v34 = vmul.f32 11.313708, %v294_v32  ;;  %s313_s27 = scalar_lea.vmem [#allocation5], %s502_s16  ;;  %s323_s29 = scalar_lea.vmem [#allocation5], %s504_s18 }
  0x85   :  { %v304_v35 = vld [vmem:[%s303_s2] sm:$0x1]  ;;  %s316_s28 = scalar_lea.vmem [#allocation8], %s503_s17  ;;  %s326_s0 = scalar_lea.vmem [#allocation8], %s505_s19 }
  0x86   :  { %v307_v36 = vld [vmem:[%s306_s26] sm:$0x1]  ;;  %v305_v37 = vmul.f32 11.313708, %v304_v35  ;;  %v298_v38 = vadd.f32 %v297_v33, %v295_v34  ;;  %s333_s30 = scalar_lea.vmem [#allocation5], %s742_s20  ;;  %s343_s5 = scalar_lea.vmem [#allocation5], %s746_s22 }
  0x87   :  { %v314_v39 = vld [vmem:[%s313_s27] sm:$0x1]  ;;  %s336_s1 = scalar_lea.vmem [#allocation8], %s744_s21  ;;  %s346_s6 = scalar_lea.vmem [#allocation8], %s748_s23 }
  0x88   :  { %v317_v40 = vld [vmem:[%s316_s28] sm:$0x1]  ;;  %v308_v41 = vadd.f32 %v307_v36, %v305_v37  ;;  %v315_v42 = vmul.f32 11.313708, %v314_v39  ;;  %299 = vst [vmem:[#allocation10 + $0x18] sm:$0x1] %v298_v38 }
  0x89   :  { %v324_v43 = vld [vmem:[%s323_s29] sm:$0x1]  ;;  %s510_s7 = sld [smem:[#allocation3 + $0x1e]]  ;;  %s512_s9 = sld [smem:[#allocation3 + $0x1f]] }
  0x8a   :  { %v327_v44 = vld [vmem:[%s326_s0] sm:$0x1]  ;;  %v325_v45 = vmul.f32 11.313708, %v324_v43  ;;  %309 = vst [vmem:[#allocation10 + $0x19] sm:$0x1] %v308_v41  ;;  %v318_v46 = vadd.f32 %v317_v40, %v315_v42 }
  0x8b   :  { %v334_v47 = vld [vmem:[%s333_s30] sm:$0x1]  ;;  %s511_s8 = sld [smem:[#allocation4 + $0x1e]]  ;;  %s513_s10 = sld [smem:[#allocation4 + $0x1f]] }
  0x8c   :  { %v337_v48 = vld [vmem:[%s336_s1] sm:$0x1]  ;;  %v328_v49 = vadd.f32 %v327_v44, %v325_v45  ;;  %v335_v50 = vmul.f32 11.313708, %v334_v47  ;;  %319 = vst [vmem:[#allocation10 + $0x1a] sm:$0x1] %v318_v46 }
  0x8d   :  { %v344_v51 = vld [vmem:[%s343_s5] sm:$0x1]  ;;  %s623_s3 = smov [#allocation10]  }
  0x8e   :  { %v347_v52 = vld [vmem:[%s346_s6] sm:$0x1]  ;;  %v345_v53 = vmul.f32 11.313708, %v344_v51  ;;  %329 = vst [vmem:[#allocation10 + $0x1b] sm:$0x1] %v328_v49  ;;  %v338_v54 = vadd.f32 %v337_v48, %v335_v50 }
  0x8f   :  { %s375_s11 = sshll.u32 %s623_s3, 4  ;;  %s353_s14 = scalar_lea.vmem [#allocation5], %s510_s7  ;;  %s376_s11 = int_to_ptr.vmem [resolvable:$true] %s375_s11 }
  0x90   :  { %v348_v55 = vadd.f32 %v347_v52, %v345_v53  ;;  %339 = vst [vmem:[#allocation10 + $0x1c] sm:$0x1] %v338_v54  ;;  %v354_v56 = vld [vmem:[%s353_s14] sm:$0x1]  ;;  %s363_s16 = scalar_lea.vmem [#allocation5], %s512_s9  ;;  %s587_s18 = scalar_lea.vmem %s376_s11, 512 }
  0x91   :  { %s356_s15 = scalar_lea.vmem [#allocation8], %s511_s8  ;;  %v355_v58 = vmul.f32 11.313708, %v354_v56  ;;  %v364_v59 = vld [vmem:[%s363_s16] sm:$0x1]  ;;  %s366_s17 = scalar_lea.vmem [#allocation8], %s513_s10 }
  0x92   :  { %349 = vst [vmem:[#allocation10 + $0x1d] sm:$0x1] %v348_v55  ;;  %v357_v57 = vld [vmem:[%s356_s15] sm:$0x1]  ;;  %v365_v61 = vmul.f32 11.313708, %v364_v59  ;;  %p588_p10 = scmp.ne.s32.totalorder %s376_s11, %s587_s18  ;;  %p592_p11 = scmp.lt.s32.totalorder %s376_s11, %s376_s11 }
  0x93   :  { %v367_v60 = vld [vmem:[%s366_s17] sm:$0x1]  ;;  %v358_v62 = vadd.f32 %v357_v57, %v355_v58  ;;  %p593_p12 = scmp.lt.s32.totalorder %s587_s18, %s587_s18 }
  0x94   :  { %v368_v63 = vadd.f32 %v367_v60, %v365_v61 }
  0x95   :  { %359 = vst [vmem:[#allocation10 + $0x1e] sm:$0x1] %v358_v62  ;;  %p594_p13 = por %p593_p12, %p592_p11 }
  0x96   :  { %369 = vst [vmem:[#allocation10 + $0x1f] sm:$0x1] %v368_v63 }
  0x97   :  { %p595_p0 = pnand %p594_p13, %p588_p10 }
  0x99   :  { %598 = shalt.err (!%p595_p0)
}
  0x9a   :  { %s599_s21 = scalar_lea.hbm %s772_s4, 512 }
  0x9b   :  { %p600_p1 = scmp.ne.s32.totalorder %s772_s4, %s599_s21  ;;  %p603_p2 = scmp.lt.u32.totalorder %s599_s21, %s772_s4 }
  0x9d   :  { %p605_p3 = pnand %p603_p2, %p600_p1 }
  0x9f   :  { %608 = shalt.err (!%p605_p3)
}
  0xa0   :  { %381 = dma.vmem_to_hbm [thread:$0]  %s376_s11, 512, %s772_s4, [#allocation7], %s620_s12, %s620_s12, %s621_s13  }
  0xa1   :  { %615 = dma.done.wait [#allocation7], 512  }
  0xa2   :  { %616 = vsyncadd [#allocation7], 4294966784 }
  0xa3   :  { %385 = vsyncpa [#allocation6], 1 }
  0xa4   :  { %386 = vsyncpa [#allocation9], 1 }
  0xa5   :  { %387 = vsyncpa [#allocation7], 1 }

</bundles_post_ra>
